<compile_context>
chip_gen: v7x
topology: tpu7x:2x2x1
jax: 0.10.0
libtpu: 0.0.40
codegen_flags: <defaults>
</compile_context>

<pallas_src>
import jax
import jax.numpy as jnp
from jax.experimental import pallas as pl
from jax.experimental.pallas import tpu as pltpu


def attkq_kernel(x_ref, z_ref, wq_t_ref, wk_ref, v_ref, out_ref):
    x = x_ref[...]          # (tn, T, D) f32
    z = z_ref[...]          # (tn, D)
    wq_t = wq_t_ref[...]    # (D, D)  pre-transposed: q = z @ wq_t
    wk = wk_ref[...]        # (D, D)  torch (out, in) layout
    v = v_ref[...]          # (1, D)

    # --- algebraic fold #1: query length is 1, so fold Wk into the query ---
    #   scores = (z Wq^T) (X Wk^T)^T = ((z Wq^T) Wk) X^T
    q = jnp.dot(z, wq_t, preferred_element_type=jnp.float32)     # (tn, D)
    qk = jnp.dot(q, wk, preferred_element_type=jnp.float32)      # (tn, D)

    # scores over the sequence: VPU multiply + lane reduce over D
    s = jnp.sum(qk[:, None, :] * x, axis=-1)                     # (tn, T)

    # --- algebraic fold #2: fold v into X before the softmax weighting ---
    xv = jnp.sum(x * v[None, :, :], axis=-1)                     # (tn, T)

    # Numerically stable softmax-weighted sum without materializing the probs.
    m = jnp.max(s, axis=-1, keepdims=True)                       # (tn, 1)
    e = jnp.exp(s - m)                                           # (tn, T)

    # Reduce over T with a ones-matvec so the result lands lane-major
    # (batch on lanes) -> lane-dense, unmasked stores into the (1, tn) block.
    t = e.shape[1]
    ones_t = jnp.ones((1, t), jnp.float32)
    num = jnp.dot(ones_t, (e * xv).T, preferred_element_type=jnp.float32)  # (1, tn)
    den = jnp.dot(ones_t, e.T, preferred_element_type=jnp.float32)         # (1, tn)

    # EUP reciprocal instead of a VPU divide.
    out_ref[...] = num * pl.reciprocal(den, approx=True)


def attkq_forward(x, z, wq, wk, v):
    n, t, d = x.shape
    x = jnp.asarray(x, jnp.float32)
    z = jnp.asarray(z, jnp.float32)

    # Tile over the batch so DMA of tile i+1 overlaps compute of tile i and the
    # batch axis can be sharded across TensorCores ("parallel").
    # 512 keeps the double-buffered x tiles tiny vs. scoped VMEM on all gens,
    # and is a multiple of (8, 128) so every BlockSpec stays legal.
    tile_n = n if n <= 512 else 512
    n_pad = pl.cdiv(n, tile_n) * tile_n
    if n_pad != n:
        # zero padding is safe: padded rows give s = 0, xv = 0 -> y = 0
        x = jnp.pad(x, ((0, n_pad - n), (0, 0), (0, 0)))
        z = jnp.pad(z, ((0, n_pad - n), (0, 0)))

    # Layout plumbing in the wrapper (free): Linear(x) = x @ W.T, so pass Wq
    # already transposed; keep v as a lane-major (1, D) row.
    wq_t = jnp.asarray(wq, jnp.float32).T
    wk_f = jnp.asarray(wk, jnp.float32)
    v_row = jnp.asarray(v, jnp.float32).reshape(1, d)

    grid = (n_pad // tile_n,)

    flops = 4 * n_pad * d * d + 8 * n_pad * t * d
    bytes_accessed = 4 * (n_pad * t * d + n_pad * d + 2 * d * d + d + n_pad)

    out = pl.pallas_call(
        attkq_kernel,
        out_shape=jax.ShapeDtypeStruct((1, n_pad), jnp.float32),
        grid=grid,
        in_specs=[
            pl.BlockSpec((tile_n, t, d), lambda i: (i, 0, 0)),   # X tile
            pl.BlockSpec((tile_n, d), lambda i: (i, 0)),         # z tile
            pl.BlockSpec((d, d), lambda i: (0, 0)),              # Wq^T (broadcast)
            pl.BlockSpec((d, d), lambda i: (0, 0)),              # Wk   (broadcast)
            pl.BlockSpec((1, d), lambda i: (0, 0)),              # v row
        ],
        out_specs=pl.BlockSpec((1, tile_n), lambda i: (0, i)),   # lane-dense slab
        compiler_params=pltpu.CompilerParams(
            dimension_semantics=("parallel",),
            vmem_limit_bytes=32 * 1024 * 1024,
        ),
        cost_estimate=pl.CostEstimate(
            flops=flops,
            transcendentals=n_pad * (t + 1),
            bytes_accessed=bytes_accessed,
        ),
    )(x, z, wq_t, wk_f, v_row)

    # lane-dense (1, n_pad) slab -> (n, 1), matching torch's output shape
    return out[0, :n].reshape(n, 1)


def _reference(x, z, wq, wk, v):
    # plain-JAX reference mirroring the PyTorch forward
    q = z[:, None, :] @ wq.T                       # (N, 1, D)
    k = x @ wk.T                                   # (N, T, D)
    s = q @ jnp.swapaxes(k, -2, -1)                # (N, 1, T)
    p = jax.nn.softmax(s, axis=-1)
    o = p @ x                                      # (N, 1, D)
    return o @ v                                   # (N, 1)


if __name__ == "__main__":
    N, T, D = 2, 8, 32
    std = 0.01

    key = jax.random.PRNGKey(0)
    k_x, k_z, k_wq, k_wk, k_v = jax.random.split(key, 5)

    # Deterministic parameter init mirroring the module's __init__:
    #   Q.weight ~ N(0, 1), K.weight ~ N(0, std), v = randn(D) * std
    wq = jax.random.normal(k_wq, (D, D), dtype=jnp.float32)
    wk = jax.random.normal(k_wk, (D, D), dtype=jnp.float32) * std
    v = jax.random.normal(k_v, (D,), dtype=jnp.float32) * std

    # Inputs
    x = jax.random.normal(k_x, (N, T, D), dtype=jnp.float32)   # input_seq
    z = jax.random.normal(k_z, (N, D), dtype=jnp.float32)      # cross_input

    out = attkq_forward(x, z, wq, wk, v)
    out = jax.block_until_ready(out)

    ref = _reference(x, z, wq, wk, v)
    assert out.shape == (N, 1), out.shape
    # Tolerance covers the EUP approximate reciprocal used for the softmax
    # denominator (everything else is exact f32).
    assert jnp.allclose(out, ref, atol=1e-3, rtol=1e-3), (out, ref)

    print("KERNEL_OK")
</pallas_src>

<mosaic_0001>
module attributes {stable_mosaic.version = 11 : i64} {
  func.func @attkq_kernel(%arg0: i32, %arg1: memref<2x8x32xf32, #tpu.memory_space<vmem>>, %arg2: memref<2x32xf32, #tpu.memory_space<vmem>>, %arg3: memref<32x32xf32, #tpu.memory_space<vmem>>, %arg4: memref<32x32xf32, #tpu.memory_space<vmem>>, %arg5: memref<1x32xf32, #tpu.memory_space<vmem>>, %arg6: memref<1x2xf32, #tpu.memory_space<vmem>>) attributes {dimension_semantics = [#tpu.dimension_semantics<parallel>], iteration_bounds = array<i64: 1>, scalar_prefetch = 0 : i64, scratch_operands = 0 : i64, tpu.core_type = #tpu.core_type<tc>, window_params = [{transform_indices = @transform_0, window_bounds = array<i64: 2, 8, 32>}, {transform_indices = @transform_1, window_bounds = array<i64: 2, 32>}, {pipeline_mode = #tpu.pipeline_mode<synchronous>, transform_indices = @transform_2, window_bounds = array<i64: 32, 32>}, {pipeline_mode = #tpu.pipeline_mode<synchronous>, transform_indices = @transform_3, window_bounds = array<i64: 32, 32>}, {pipeline_mode = #tpu.pipeline_mode<synchronous>, transform_indices = @transform_4, window_bounds = array<i64: 1, 32>}, {transform_indices = @transform_5, window_bounds = array<i64: 1, 2>}]} {
    %c0 = arith.constant 0 : index
    %c0_0 = arith.constant 0 : index
    %c0_1 = arith.constant 0 : index
    %0 = vector.load %arg1[%c0, %c0_0, %c0_1] : memref<2x8x32xf32, #tpu.memory_space<vmem>>, vector<2x8x32xf32>
    %c0_2 = arith.constant 0 : index
    %c0_3 = arith.constant 0 : index
    %1 = vector.load %arg2[%c0_2, %c0_3] : memref<2x32xf32, #tpu.memory_space<vmem>>, vector<2x32xf32>
    %c0_4 = arith.constant 0 : index
    %c0_5 = arith.constant 0 : index
    %2 = vector.load %arg3[%c0_4, %c0_5] : memref<32x32xf32, #tpu.memory_space<vmem>>, vector<32x32xf32>
    %c0_6 = arith.constant 0 : index
    %c0_7 = arith.constant 0 : index
    %3 = vector.load %arg4[%c0_6, %c0_7] : memref<32x32xf32, #tpu.memory_space<vmem>>, vector<32x32xf32>
    %c0_8 = arith.constant 0 : index
    %c0_9 = arith.constant 0 : index
    %4 = vector.load %arg5[%c0_8, %c0_9] : memref<1x32xf32, #tpu.memory_space<vmem>>, vector<1x32xf32>
    %cst = arith.constant dense<0.000000e+00> : vector<2x32xf32>
    %5 = tpu.matmul %1, %2, %cst {dimension_numbers = #tpu.dot_dimension_numbers<[1], [0], [0], [1], [0, 0, 1, 1], [], []>} : vector<2x32xf32>, vector<32x32xf32>, vector<2x32xf32> -> vector<2x32xf32>
    %cst_10 = arith.constant dense<0.000000e+00> : vector<2x32xf32>
    %6 = tpu.matmul %5, %3, %cst_10 {dimension_numbers = #tpu.dot_dimension_numbers<[1], [0], [0], [1], [0, 0, 1, 1], [], []>} : vector<2x32xf32>, vector<32x32xf32>, vector<2x32xf32> -> vector<2x32xf32>
    %7 = vector.shape_cast %6 : vector<2x32xf32> to vector<2x1x32xf32>
    %8 = vector.broadcast %7 : vector<2x1x32xf32> to vector<2x8x32xf32>
    %9 = arith.mulf %8, %0 : vector<2x8x32xf32>
    %cst_11 = arith.constant dense<0.000000e+00> : vector<2x8xf32>
    %10 = vector.multi_reduction <add>, %9, %cst_11 [2] : vector<2x8x32xf32> to vector<2x8xf32>
    %11 = vector.shape_cast %4 : vector<1x32xf32> to vector<1x1x32xf32>
    %12 = vector.broadcast %11 : vector<1x1x32xf32> to vector<2x8x32xf32>
    %13 = arith.mulf %0, %12 : vector<2x8x32xf32>
    %cst_12 = arith.constant dense<0.000000e+00> : vector<2x8xf32>
    %14 = vector.multi_reduction <add>, %13, %cst_12 [2] : vector<2x8x32xf32> to vector<2x8xf32>
    %cst_13 = arith.constant dense<0xFF800000> : vector<2xf32>
    %15 = vector.multi_reduction <maximumf>, %10, %cst_13 [1] : vector<2x8xf32> to vector<2xf32>
    %16 = vector.shape_cast %15 : vector<2xf32> to vector<2x1xf32>
    %17 = vector.broadcast %16 : vector<2x1xf32> to vector<2x8xf32>
    %18 = arith.subf %10, %17 : vector<2x8xf32>
    %19 = math.exp %18 : vector<2x8xf32>
    %cst_14 = arith.constant 1.000000e+00 : f32
    %20 = vector.broadcast %cst_14 : f32 to vector<1x8xf32>
    %21 = arith.mulf %19, %14 : vector<2x8xf32>
    %22 = tpu.transpose %21, [1, 0] : vector<2x8xf32> -> vector<8x2xf32>
    %cst_15 = arith.constant dense<0.000000e+00> : vector<1x2xf32>
    %23 = tpu.matmul %20, %22, %cst_15 {dimension_numbers = #tpu.dot_dimension_numbers<[1], [0], [0], [1], [0, 0, 1, 1], [], []>} : vector<1x8xf32>, vector<8x2xf32>, vector<1x2xf32> -> vector<1x2xf32>
    %24 = tpu.transpose %19, [1, 0] : vector<2x8xf32> -> vector<8x2xf32>
    %cst_16 = arith.constant dense<0.000000e+00> : vector<1x2xf32>
    %25 = tpu.matmul %20, %24, %cst_16 {dimension_numbers = #tpu.dot_dimension_numbers<[1], [0], [0], [1], [0, 0, 1, 1], [], []>} : vector<1x8xf32>, vector<8x2xf32>, vector<1x2xf32> -> vector<1x2xf32>
    %26 = tpu.reciprocal %25 {approx = true} : vector<1x2xf32> -> vector<1x2xf32>
    %27 = arith.mulf %23, %26 : vector<1x2xf32>
    %c0_17 = arith.constant 0 : index
    %c0_18 = arith.constant 0 : index
    %28 = vector.load %arg6[%c0_17, %c0_18] : memref<1x2xf32, #tpu.memory_space<vmem>>, vector<1x2xf32>
    tpu.vector_store %arg6[%c0_17, %c0_18], %27 {strides = array<i32>} : memref<1x2xf32, #tpu.memory_space<vmem>>, vector<1x2xf32>,
    return
  }
  func.func @transform_0(%arg0: i32) -> (i32, i32, i32) {
    %c0_i32 = arith.constant 0 : i32
    %c0_i32_0 = arith.constant 0 : i32
    %c0_i32_1 = arith.constant 0 : i32
    return %arg0, %c0_i32, %c0_i32_0 : i32, i32, i32
  }
  func.func @transform_1(%arg0: i32) -> (i32, i32) {
    %c0_i32 = arith.constant 0 : i32
    %c0_i32_0 = arith.constant 0 : i32
    return %arg0, %c0_i32 : i32, i32
  }
  func.func @transform_2(%arg0: i32) -> (i32, i32) {
    %c0_i32 = arith.constant 0 : i32
    %c0_i32_0 = arith.constant 0 : i32
    %c0_i32_1 = arith.constant 0 : i32
    return %c0_i32, %c0_i32_0 : i32, i32
  }
  func.func @transform_3(%arg0: i32) -> (i32, i32) {
    %c0_i32 = arith.constant 0 : i32
    %c0_i32_0 = arith.constant 0 : i32
    %c0_i32_1 = arith.constant 0 : i32
    return %c0_i32, %c0_i32_0 : i32, i32
  }
  func.func @transform_4(%arg0: i32) -> (i32, i32) {
    %c0_i32 = arith.constant 0 : i32
    %c0_i32_0 = arith.constant 0 : i32
    %c0_i32_1 = arith.constant 0 : i32
    return %c0_i32, %c0_i32_0 : i32, i32
  }
  func.func @transform_5(%arg0: i32) -> (i32, i32) {
    %c0_i32 = arith.constant 0 : i32
    %c0_i32_0 = arith.constant 0 : i32
    return %c0_i32, %arg0 : i32, i32
  }
}

</mosaic_0001>

<bundles_post_ra>
// kernel: tpu_custom_call.1
= control target key start
LH: loop header
LB: loop body
LE: loop exit
PB: predicated region body
PF: predicated region fallthrough
CT: control target
= control target key end

     0   :  { %10 = vsyncpa [#allocation3], 0  ;;  %s820_s0 = inlined_call_operand.hbm [shape: f32[2,8,32], index: 0, kind: input, shape index: {}]   ;;  %s821_s1 = inlined_call_operand.vmem [shape: f32[2,32], index: 1, kind: input, shape index: {}]   ;;  %s822_s2 = inlined_call_operand.hbm [shape: f32[32,32], index: 2, kind: input, shape index: {}]   ;;  %s823_s3 = inlined_call_operand.hbm [shape: f32[32,32], index: 3, kind: input, shape index: {}]   ;;  %s824_s4 = inlined_call_operand.vmem [shape: f32[1,32], index: 4, kind: input, shape index: {}]   ;;  %s825_s5 = inlined_call_operand.hbm [shape: f32[1,2], index: 5, kind: output, shape index: {}]  }
   0x1   :  { %11 = vsyncpa [#allocation6], 0 }
   0x2   :  { %12 = vsyncpa [#allocation4], 0  ;;  %s695_s18 = smov [#allocation5]   ;;  %s696_s20 = smov [#allocation2]  }
   0x3   :  { %s32_s19 = sshll.u32 %s695_s18, 4  ;;  %s18_s21 = sshll.u32 %s696_s20, 4  ;;  %s33_s19 = int_to_ptr.vmem [resolvable:$true] %s32_s19  ;;  %s737_s21 = int_to_ptr.vmem [resolvable:$true] %s18_s21 }
   0x4   :  { %s601_s24 = scalar_lea.hbm %s822_s2, 512 }
   0x5   :  { %p602_p0 = scmp.ne.s32.totalorder %s822_s2, %s601_s24  ;;  %p605_p1 = scmp.lt.u32.totalorder %s601_s24, %s822_s2 }
   0x7   :  { %p607_p2 = pnand %p605_p1, %p602_p0 }
   0x9   :  { %610 = shalt.err (!%p607_p2)
}
   0xa   :  { %s611_s29 = scalar_lea.vmem %s33_s19, 512  ;;  %p616_p4 = scmp.lt.s32.totalorder %s33_s19, %s33_s19 }
   0xb   :  { %p612_p3 = scmp.ne.s32.totalorder %s33_s19, %s611_s29  ;;  %p617_p5 = scmp.lt.s32.totalorder %s611_s29, %s611_s29 }
   0xd   :  { %p618_p6 = por %p617_p5, %p616_p4 }
   0xf   :  { %p619_p7 = pnand %p618_p6, %p612_p3 }
  0x11   :  { %622 = shalt.err (!%p619_p7)
}
  0x12   :  { %s697_s30 = smov 128   ;;  %s698_s6 = smov 8  }
  0x13   :  { %38 = dma.hbm_to_vmem [thread:$0]  %s822_s2, 512, %s33_s19, [#allocation6], %s697_s30, %s697_s30, %s698_s6  }
  0x14   :  { %s623_s11 = scalar_lea.hbm %s820_s0, 256 }
  0x15   :  { %p624_p8 = scmp.ne.s32.totalorder %s820_s0, %s623_s11  ;;  %p627_p9 = scmp.lt.u32.totalorder %s623_s11, %s820_s0 }
  0x17   :  { %p629_p10 = pnand %p627_p9, %p624_p8 }
  0x19   :  { %632 = shalt.err (!%p629_p10)
}
  0x1a   :  { %s633_s16 = scalar_lea.vmem %s737_s21, 256  ;;  %p638_p12 = scmp.lt.s32.totalorder %s737_s21, %s737_s21 }
  0x1b   :  { %p634_p11 = scmp.ne.s32.totalorder %s737_s21, %s633_s16  ;;  %p639_p13 = scmp.lt.s32.totalorder %s633_s16, %s633_s16 }
  0x1d   :  { %p640_p0 = por %p639_p13, %p638_p12 }
  0x1f   :  { %p641_p1 = pnand %p640_p0, %p634_p11 }
  0x21   :  { %644 = shalt.err (!%p641_p1)
}
  0x22   :  { %24 = dma.hbm_to_vmem [thread:$0]  %s820_s0, 256, %s737_s21, [#allocation3], %s697_s30, %s697_s30, %s698_s6  }
  0x23   :  { %s699_s18 = smov [#allocation7]   ;;  %s645_s23 = scalar_lea.hbm %s823_s3, 512 }
  0x24   :  { %s44_s19 = sshll.u32 %s699_s18, 4  ;;  %p646_p2 = scmp.ne.s32.totalorder %s823_s3, %s645_s23  ;;  %s45_s19 = int_to_ptr.vmem [resolvable:$true] %s44_s19 }
  0x25   :  { %p649_p3 = scmp.lt.u32.totalorder %s645_s23, %s823_s3 }
  0x27   :  { %p651_p4 = pnand %p649_p3, %p646_p2 }
  0x29   :  { %654 = shalt.err (!%p651_p4)
}
  0x2a   :  { %s655_s28 = scalar_lea.vmem %s45_s19, 512  ;;  %p660_p6 = scmp.lt.s32.totalorder %s45_s19, %s45_s19 }
  0x2b   :  { %p656_p5 = scmp.ne.s32.totalorder %s45_s19, %s655_s28  ;;  %p661_p7 = scmp.lt.s32.totalorder %s655_s28, %s655_s28 }
  0x2d   :  { %p662_p8 = por %p661_p7, %p660_p6 }
  0x2f   :  { %p663_p9 = pnand %p662_p8, %p656_p5 }
  0x31   :  { %666 = shalt.err (!%p663_p9)
}
  0x32   :  { %50 = dma.hbm_to_vmem [thread:$0]  %s823_s3, 512, %s45_s19, [#allocation6], %s697_s30, %s697_s30, %s698_s6  }
  0x33   :  { %689 = dma.done.wait [#allocation3], 256  }
  0x34   :  { %690 = vsyncadd [#allocation3], 4294967040 }
  0x35   :  { %691 = dma.done.wait [#allocation6], 1024  }
  0x36   :  { %692 = vsyncadd [#allocation6], 4294966272  ;;  %v700_v0 = vmov 0.0|0.0   ;;  %vm701_vm0 = vmmov 0   ;;  %v702_v1 = vmov 0.0   ;;  %v65_v2 = vld [vmem:[#allocation5] sm:$0xff]  ;;  %v225_v19 = vlaneseq }
  0x37   :  { %569 = vmatprep.subr.bf16.mxu0 %v700_v0  ;;  %545 = vmatprep.mubr.msk.f32.mxu0 %vm701_vm0, %v702_v1  ;;  %v66_v3 = vld [vmem:[#allocation5 + $0x8] sm:$0xff]  ;;  %v67_v4 = vld [vmem:[#allocation5 + $0x10] sm:$0xff]  ;;  %v68_v6 = vld [vmem:[#allocation5 + $0x18] sm:$0xff]  ;;  %vm74_vm1 = vcmask 261120   ;;  %v703_v17 = vmov 1966171168  }
  0x38   :  { %575 = vmatprep.subr.bf16.mxu1 %v700_v0  ;;  %556 = vmatprep.mubr.msk.f32.mxu1 %vm701_vm0, %v702_v1  ;;  %v570_v5 = vpack.c.bf16 %v66_v3, %v65_v2  ;;  %v69_v7 = vld [vmem:[#allocation7] sm:$0xff]  ;;  %v70_v8 = vld [vmem:[#allocation7 + $0x8] sm:$0xff]  ;;  %v71_v9 = vld [vmem:[#allocation7 + $0x10] sm:$0xff]  ;;  %v573_v11 = vpack.c.bf16 %v68_v6, %v67_v4  ;;  %v223_v18 = vunpack.c.l.s4 %v703_v17  ;;  %v226_v21 = vshrl.u32 %v225_v19, 7 }
  0x39   :  { %v72_v10 = vld [vmem:[#allocation7 + $0x18] sm:$0xff]  ;;  %v576_v12 = vpack.c.bf16 %v70_v8, %v69_v7  ;;  %v64_v14 = vld [vmem:[%s821_s1] sm:$0x3]  ;;  %v279_v42 = vand.u32 127, %v225_v19  ;;  %vm288_vm2 = vcmask 1041409   ;;  %vm291_vm3 = vcmask 58368  }
  0x3a   :  { %571 = vmatpush3.bf16.msra.mxu0 %v570_v5  ;;  %v579_v13 = vpack.c.bf16 %v72_v10, %v71_v9  ;;  %v224_v20 = vunpack.c.0.s8 %v223_v18  ;;  %v246_v26 = vsub.s32 0, %v226_v21  ;;  %v62_v29 = vld [vmem:[#allocation2] sm:$0xff]  ;;  %v63_v32 = vld [vmem:[#allocation2 + $0x8] sm:$0xff]  ;;  %v704_v51 = vmov 0  }
  0x3b   :  { %572 = vmatprep.subr.bf16.mxu0 %v700_v0  ;;  %577 = vmatpush3.bf16.msra.mxu1 %v576_v12  ;;  %v518_v38 = vld [vmem:[%s824_s4] ss:$0 sm:$0xff]  ;;  %v282_v44 = vsub.s32 %v279_v42, %v226_v21  ;;  %v302_v52 = vsub.s32 1, %v226_v21  ;;  %vm331_vm4 = vcmask 64512   ;;  %v705_v8 = vmov 1.0   ;;  %s706_s4 = smov [#allocation8]  }
  0x3c   :  { %578 = vmatprep.subr.bf16.mxu1 %v700_v0  ;;  %v227_v22 = vsub.s32 %v224_v20, %v226_v21  ;;  %v269_v39 = vmul.f32 %v518_v38, %v63_v32  ;;  %v268_v40 = vmul.f32 %v518_v38, %v62_v29  ;;  %594 = vset.pattern.permute.xlu0 %v704_v51  ;;  %s506_s6 = sshll.u32 %s706_s4, 4  ;;  %vm498_vm5 = vcmask 8192   ;;  %s507_s6 = int_to_ptr.vmem [resolvable:$true] %s506_s6 }
  0x3d   :  { %593 = vset.pattern.permute.xlu1 %v704_v51  ;;  %s667_s7 = scalar_lea.vmem %s507_s6, 16  ;;  %s671_s8 = scalar_lea.vmem %s507_s6, 32 }
  0x3e   :  { %574 = vmatpush3.bf16.msra.mxu0 %v573_v11  ;;  %v273_v41 = vsel %vm74_vm1, %v269_v39, 0.0  ;;  %v270_v50 = vsel %vm74_vm1, %v268_v40, 0.0  ;;  %p668_p10 = scmp.ne.s32.totalorder %s507_s6, %s667_s7  ;;  %p672_p11 = scmp.lt.s32.totalorder %s507_s6, %s507_s6 }
  0x3f   :  { %559 = vmatprep.subr.mxu0 %v702_v1  ;;  %580 = vmatpush3.bf16.msra.mxu1 %v579_v13  ;;  %p673_p12 = scmp.lt.s32.totalorder %s671_s8, %s667_s7 }
  0x40   :  { %564 = vmatprep.subr.mxu1 %v702_v1 }
  0x41   :  { %546 = vmatmul.mubr.msk.f32.vlgmr.msra.gmra.mrb[0].mxu0 %vm74_vm1, %v64_v14  ;;  %p674_p13 = por %p673_p12, %p672_p11 }
  0x42   :  { %561 = vmatprep.mubr.msk.f32.mxu0 %vm701_vm0, %v702_v1 }
  0x43   :  { %p675_p0 = pnand %p674_p13, %p668_p10 }
 0x114   :  { %v144_v15 = vpop.f32.mrb[0].mxu0 }
 0x115   :  { %v547_v16 = vpop.f32.mrb[1].mxu0  ;;  %557 = vmatmul.mubr.msk.f32.vlgmr.msra.gmra.mrb[0].mxu1 %vm74_vm1, %v144_v15 }
 0x116   :  { %566 = vmatprep.mubr.msk.f32.mxu1 %vm701_vm0, %v702_v1 }
 0x1e8   :  { %v217_v23 = vpop.f32.mrb[0].mxu1 }
 0x1e9   :  { %v228_v24 = vrot.slane %v217_v23, %v227_v22  ;;  %v558_v25 = vpop.f32.mrb[1].mxu1 }
 0x1eb   :  { %v229_v27 = vcombine.high %v228_v24, %v228_v24  ;;  %v236_v28 = vrot.slane %v228_v24, %v227_v22 }
 0x1ed   :  { %v243_v30 = vrot.slane %v229_v27, %v227_v22  ;;  %v247_v31 = vrot.slane %v236_v28, %v246_v26 }
 0x1ef   :  { %v254_v33 = vmul.f32 %v247_v31, %v62_v29  ;;  %v251_v34 = vrot.slane %v243_v30, %v246_v26 }
 0x1f1   :  { %v256_v35 = vsel %vm74_vm1, %v254_v33, 0.0  ;;  %v255_v36 = vmul.f32 %v251_v34, %v63_v32 }
 0x1f2   :  { %257 = vadd.xlane.f32.xlu0 %v256_v35 }
 0x1f3   :  { %v259_v37 = vsel %vm74_vm1, %v255_v36, 0.0 }
 0x1f6   :  { %260 = vadd.xlane.f32.xlu0 %v259_v37 }
 0x1fa   :  { %274 = vadd.xlane.f32.xlu0 %v273_v41 }
 0x27f   :  { %v258_v43 = vpop.xlane.xlu0 %257 }
 0x280   :  { %v283_v46 = vrot.slane %v258_v43, %v282_v44 }
 0x283   :  { %v261_v45 = vpop.xlane.xlu0 %260 }
 0x284   :  { %v287_v47 = vrot.slane %v261_v45, %v282_v44 }
 0x286   :  { %v289_v48 = vsel %vm288_vm2, %v287_v47, %v283_v46 }
 0x287   :  { %v292_v49 = vsel %vm291_vm3, %v289_v48, -inf  ;;  %v275_v0 = vpop.xlane.xlu0 %274 }
 0x288   :  { %293 = vmax.xlane.f32.xlu1 %v292_v49 }
 0x28c   :  { %271 = vadd.xlane.f32.xlu1 %v270_v50 }
 0x315   :  { %v294_v53 = vpop.xlane.xlu1 %293 }
 0x316   :  { %v299_v54 = vrot.slane %v294_v53, %v246_v26  ;;  %v303_v55 = vrot.slane %v294_v53, %v302_v52 }
 0x318   :  { %v306_v56 = vsub.f32 %v258_v43, %v299_v54  ;;  %v307_v57 = vsub.f32 %v261_v45, %v303_v55 }
 0x319   :  { %v272_v61 = vpop.xlane.xlu1 %271 }
 0x31a   :  { %v308_v58 = vmul.f32 1.442695, %v306_v56  ;;  %v310_v59 = vmul.f32 1.442695, %v307_v57 }
 0x31c   :  { %595 = vpow2.f32 %v308_v58 }
 0x31d   :  { %597 = vpow2.f32 %v310_v59 }
 0x326   :  { %v596_v60 = vpop.eup %595 }
 0x327   :  { %v598_v62 = vpop.eup %597  ;;  %410 = vperm.xlu1 %593, %v596_v60   ;;  %v312_v63 = vmul.f32 %v596_v60, %v272_v61 }
 0x328   :  { %413 = vperm.xlu0 %594, %v598_v62   ;;  %v313_v1 = vmul.f32 %v598_v62, %v275_v0 }
 0x32b   :  { %317 = vperm.xlu1 %593, %v312_v63  }
 0x32f   :  { %320 = vperm.xlu1 %593, %v313_v1  }
 0x3a6   :  { %v411_v2 = vpop.permute.xlu1 %410 }
 0x3a7   :  { %v418_v3 = vrot.slane %v411_v2, %v282_v44  ;;  %v414_v4 = vpop.permute.xlu0 %413 }
 0x3a8   :  { %v422_v5 = vrot.slane %v414_v4, %v282_v44 }
 0x3aa   :  { %v423_v6 = vsel %vm288_vm2, %v422_v5, %v418_v3  ;;  %v318_v7 = vpop.permute.xlu1 %317 }
 0x3ab   :  { %565 = vmatpush3.xpose.msk.msra.mxu1 %vm331_vm4, %v423_v6  ;;  %v325_v10 = vrot.slane %v318_v7, %v282_v44 }
 0x3ae   :  { %567 = vmatmul.mubr.msk.f32.vlgmr.msra.gmra.mrb[2].mxu1 %vm331_vm4, %v705_v8  ;;  %v321_v9 = vpop.permute.xlu1 %320 }
 0x3af   :  { %v329_v11 = vrot.slane %v321_v9, %v282_v44 }
 0x3b1   :  { %v330_v12 = vsel %vm288_vm2, %v329_v11, %v325_v10 }
 0x3b2   :  { %560 = vmatpush3.xpose.msk.msra.mxu0 %vm331_vm4, %v330_v12 }
 0x3b5   :  { %562 = vmatmul.mubr.msk.f32.vlgmr.msra.gmra.mrb[2].mxu0 %vm331_vm4, %v705_v8 }
 0x481   :  { %v492_v13 = vpop.f32.mrb[2].mxu1 }
 0x482   :  { %599 = vrcp.f32 %v492_v13  ;;  %v568_v14 = vpop.f32.mrb[3].mxu1 }
 0x488   :  { %v403_v15 = vpop.f32.mrb[2].mxu0 }
 0x489   :  { %v563_v16 = vpop.f32.mrb[3].mxu0 }
 0x48c   :  { %v600_v17 = vpop.eup %599 }
 0x48d   :  { %v497_v18 = vmul.f32 %v600_v17, %v403_v15 }
 0x48f   :  { %499 = vst.msk [vmem:[#allocation8] sm:$0x1] %vm498_vm5, %v497_v18 }
 0x490   :  { %678 = shalt.err (!%p675_p0)
}
 0x491   :  { %s679_s11 = scalar_lea.hbm %s825_s5, 16 }
 0x492   :  { %p680_p1 = scmp.ne.s32.totalorder %s825_s5, %s679_s11  ;;  %p683_p2 = scmp.lt.u32.totalorder %s679_s11, %s825_s5 }
 0x494   :  { %p685_p3 = pnand %p683_p2, %p680_p1 }
 0x496   :  { %688 = shalt.err (!%p685_p3)
}
 0x497   :  { %509 = dma.vmem_to_hbm [thread:$0]  %s507_s6, 16, %s825_s5, [#allocation4]  }
 0x498   :  { %693 = dma.done.wait [#allocation4], 16  }
 0x499   :  { %694 = vsyncadd [#allocation4], 4294967280 }
 0x49a   :  { %513 = vsyncpa [#allocation3], 1 }
 0x49b   :  { %514 = vsyncpa [#allocation6], 1 }
 0x49c   :  { %515 = vsyncpa [#allocation4], 1 }

</bundles_post_ra>
